<compile_context>
chip_gen: v6e
topology: v6e:2x2x1
jax: 0.10.0
libtpu: 0.0.40
codegen_flags: <defaults>
</compile_context>

<pallas_src>
import functools
import math

import jax
import jax.numpy as jnp
from jax import lax
from jax.experimental import pallas as pl
from jax.experimental.pallas import tpu as pltpu

# ----------------------------- configuration -------------------------------
B = 2                 # batch
L_IN = 8              # input sequence length fed to forward()
OBS_DIM = 6
ACT_DIM = 4
OUT_DIM = 10
SEQ_LENGTH_ARG = 7    # module constructor arg
SEQ_LENGTH = SEQ_LENGTH_ARG + 1   # module does seq_length += 1 -> 8
N_ATTN_HEADS = 2
N_INT_HEADS = 1
EXP_WEIGHTS = (0.3, 0.7)
N_EXP_HEADS = len(EXP_WEIGHTS)
EMBED = 8             # embed_dim_per_head
OBS_ENC = 8
ACT_ENC = 8
REW_ENC = 4
TRN_ENC = 8
IN_DIM = OBS_DIM + ACT_DIM + 1 + OBS_DIM                    # 17 (obs|act|rew|trn)
TOTAL_ENC = OBS_ENC + ACT_ENC + REW_ENC + TRN_ENC           # 28
ATTN_EMB = N_ATTN_HEADS * EMBED                             # 16
INT_EMB = N_INT_HEADS * EMBED                               # 8
EXP_EMB = N_EXP_HEADS * EMBED                               # 16
N_FIX_HEADS = N_INT_HEADS + N_EXP_HEADS                     # 3
N_HEADS = N_ATTN_HEADS + N_FIX_HEADS                        # 5
TOTAL_EMB = N_HEADS * EMBED                                 # 40
DEC_HIDDEN = 16       # decoder_hidden_size > 0 -> relu hidden + proj
EPS = 1e-5            # BatchNorm1d / LayerNorm default eps
NEG_BIG = -1e30       # additive causal mask value (exp underflows to 0 exactly)


# ----------------------- packed parameter slab layout ----------------------
def _align8(n: int) -> int:
    return (n + 7) // 8 * 8

R_ENC_W   = 0                                                   # (17, 28)
R_ATTN_W  = _align8(R_ENC_W + IN_DIM)                           # 24,  (28, 48)
R_FIX_W   = _align8(R_ATTN_W + TOTAL_ENC)                       # 56,  (28, 24)
R_FC_W    = _align8(R_FIX_W + TOTAL_ENC)                        # 88,  (40, 16)
R_PJ_W    = _align8(R_FC_W + TOTAL_EMB)                         # 128, (16, 10)
R_FIXATTN = _align8(R_PJ_W + DEC_HIDDEN)                        # 144, (24, 8)
R_CAUSAL  = _align8(R_FIXATTN + N_FIX_HEADS * SEQ_LENGTH)       # 168, (8, 8)
R_ENC_B   = R_CAUSAL + SEQ_LENGTH                               # 176, (1, 28)
R_FC_B    = R_ENC_B + 1                                         # 177, (1, 16)
R_PJ_B    = R_FC_B + 1                                          # 178, (1, 10)
SLAB_ROWS = _align8(R_PJ_B + 1)                                 # 184
SLAB_COLS = 128                                                 # lane-padded


# ------------------------------- kernel ------------------------------------
def gid_encoder_kernel(x_ref, p_ref, out_ref):
    # x_ref : (B*L, 17)  concatenated obs|act|rew|trn rows
    # p_ref : (SLAB_ROWS, 128) packed parameter/constant slab
    # out_ref: (B*L, 10)
    M, _ = x_ref.shape
    Lv = SEQ_LENGTH
    Bv = M // Lv

    # --- carve parameters out of the single packed slab (static slices) ---
    enc_w   = p_ref[R_ENC_W:R_ENC_W + IN_DIM, :TOTAL_ENC]                 # (17, 28)
    attn_w  = p_ref[R_ATTN_W:R_ATTN_W + TOTAL_ENC, :3 * ATTN_EMB]         # (28, 48)
    fix_w   = p_ref[R_FIX_W:R_FIX_W + TOTAL_ENC, :N_FIX_HEADS * EMBED]    # (28, 24)
    fc_w    = p_ref[R_FC_W:R_FC_W + TOTAL_EMB, :DEC_HIDDEN]               # (40, 16)
    pj_w    = p_ref[R_PJ_W:R_PJ_W + DEC_HIDDEN, :OUT_DIM]                 # (16, 10)
    fix_att = p_ref[R_FIXATTN:R_FIXATTN + N_FIX_HEADS * Lv, :Lv]          # (24, 8)
    causal  = p_ref[R_CAUSAL:R_CAUSAL + Lv, :Lv]                          # (8, 8) additive
    enc_b   = p_ref[R_ENC_B:R_ENC_B + 1, :TOTAL_ENC]                      # (1, 28)
    fc_b    = p_ref[R_FC_B:R_FC_B + 1, :DEC_HIDDEN]                       # (1, 16)
    pj_b    = p_ref[R_PJ_B:R_PJ_B + 1, :OUT_DIM]                          # (1, 10)

    x = x_ref[...]                                                        # (M, 17)

    # Fused per-input BatchNorm1d (training-mode batch stats, gamma=1, beta=0):
    # BN is per-feature, so the 4 original BN modules collapse exactly into one
    # pass over the concatenated features.  One-pass moments (E[x^2]-mean^2).
    mean = jnp.mean(x, axis=0, keepdims=True)
    var = jnp.mean(x * x, axis=0, keepdims=True) - mean * mean
    xn = (x - mean) * lax.rsqrt(var + EPS)

    # Fused obs/act/rew/trn Linear encoders (block-diagonal weight) + bias.
    # encoder_activation = identity.
    enc = jnp.dot(xn, enc_w, preferred_element_type=jnp.float32) + enc_b  # (M, 28)

    # LayerNorm(total_encode_dim), gamma=1 beta=0 (posn_embedder = identity).
    mu = jnp.mean(enc, axis=-1, keepdims=True)
    lvar = jnp.mean(enc * enc, axis=-1, keepdims=True) - mu * mu
    ln = (enc - mu) * lax.rsqrt(lvar + EPS)

    # Bias-free projections: learned attention over LN(enc), fixed heads over enc.
    qkv = jnp.dot(ln, attn_w, preferred_element_type=jnp.float32)
    qkv = qkv.reshape(Bv, Lv, 3 * ATTN_EMB)                               # (B, L, 48)
    fix_p = jnp.dot(enc, fix_w, preferred_element_type=jnp.float32)
    fix_p = fix_p.reshape(Bv, Lv, N_FIX_HEADS * EMBED)                    # (B, L, 24)

    # Head-major stacking along axis 0 (n = head*B + batch) so that a single
    # leading-batch dot_general handles all heads at once.
    q_all = jnp.concatenate(
        [qkv[:, :, h * EMBED:(h + 1) * EMBED] for h in range(N_ATTN_HEADS)],
        axis=0)                                                           # (2B, L, E)
    k_all = jnp.concatenate(
        [qkv[:, :, ATTN_EMB + h * EMBED:ATTN_EMB + (h + 1) * EMBED]
         for h in range(N_ATTN_HEADS)], axis=0)                           # (2B, L, E)
    # All 5 heads' values (2 learned + integral + 2 exp-smoothing), head-major.
    v_all = jnp.concatenate(
        [qkv[:, :, 2 * ATTN_EMB + h * EMBED:2 * ATTN_EMB + (h + 1) * EMBED]
         for h in range(N_ATTN_HEADS)]
        + [fix_p[:, :, h * EMBED:(h + 1) * EMBED] for h in range(N_FIX_HEADS)],
        axis=0)                                                           # (5B, L, E)

    # Learned scores: ONE dot_general; 1/sqrt(E) already folded into Q columns.
    s = jnp.einsum('nle,nme->nlm', q_all, k_all,
                   preferred_element_type=jnp.float32)                    # (2B, L, L)
    s = s + causal[None]          # additive causal mask (0 / -1e30)
    # ONE softmax for both learned heads (single max/exp/sum/reciprocal pass).
    e = jnp.exp(s - jnp.max(s, axis=-1, keepdims=True))
    p = e * pl.reciprocal(jnp.sum(e, axis=-1, keepdims=True), approx=True)

    # Fixed attention matrices (integral + exp-smoothing) replicated over the
    # batch, head-major, then fused with the softmax probs so that ALL head
    # outputs come from ONE dot_general.
    fix_a = jnp.concatenate(
        [jnp.broadcast_to(fix_att[h * Lv:(h + 1) * Lv, :], (Bv, Lv, Lv))
         for h in range(N_FIX_HEADS)], axis=0)                            # (3B, L, L)
    attn_all = jnp.concatenate([p, fix_a], axis=0)                        # (5B, L, L)
    o_all = jnp.einsum('nlm,nme->nle', attn_all, v_all,
                       preferred_element_type=jnp.float32)                # (5B, L, E)

    # (attn @ projs).transpose(1,2).view(B, L, total_embedding): head-major
    # feature layout with rows back in (b, l) order.
    xh = jnp.concatenate(
        [o_all[h * Bv:(h + 1) * Bv] for h in range(N_HEADS)],
        axis=-1).reshape(M, TOTAL_EMB)                                    # (M, 40)

    # BatchNorm1d(total_embedding), training-mode batch stats, gamma=1 beta=0.
    m2 = jnp.mean(xh, axis=0, keepdims=True)
    v2 = jnp.mean(xh * xh, axis=0, keepdims=True) - m2 * m2
    xb = (xh - m2) * lax.rsqrt(v2 + EPS)

    # decoder: fc -> relu -> proj -> tanh; flat lane-contiguous output slab.
    hdn = jnp.maximum(
        jnp.dot(xb, fc_w, preferred_element_type=jnp.float32) + fc_b, 0.0)
    out_ref[...] = jnp.tanh(
        jnp.dot(hdn, pj_w, preferred_element_type=jnp.float32) + pj_b)


# ------------------------------ parameters ---------------------------------
def init_params(key):
    """Build the single packed (SLAB_ROWS, 128) f32 parameter slab."""
    f32 = jnp.float32
    std = 0.02                     # _init_weights for nn.Linear
    stdp = 0.02 / math.sqrt(2.0)   # *.proj.weight override
    ks = jax.random.split(key, 9)

    # individual encoder weights (same init distribution as the torch module)
    obs_w = jax.random.normal(ks[0], (OBS_DIM, OBS_ENC), f32) * std
    act_w = jax.random.normal(ks[1], (ACT_DIM, ACT_ENC), f32) * std
    rew_w = jax.random.normal(ks[2], (1, REW_ENC), f32) * std
    trn_w = jax.random.normal(ks[3], (OBS_DIM, TRN_ENC), f32) * std

    # fused block-diagonal encoder weight (exact: BatchNorm is per-feature)
    enc_w = jnp.zeros((IN_DIM, TOTAL_ENC), f32)
    enc_w = enc_w.at[0:OBS_DIM, 0:OBS_ENC].set(obs_w)
    enc_w = enc_w.at[OBS_DIM:OBS_DIM + ACT_DIM,
                     OBS_ENC:OBS_ENC + ACT_ENC].set(act_w)
    enc_w = enc_w.at[OBS_DIM + ACT_DIM:OBS_DIM + ACT_DIM + 1,
                     OBS_ENC + ACT_ENC:OBS_ENC + ACT_ENC + REW_ENC].set(rew_w)
    enc_w = enc_w.at[OBS_DIM + ACT_DIM + 1:,
                     OBS_ENC + ACT_ENC + REW_ENC:].set(trn_w)

    # qkv projection with the 1/sqrt(embed_dim_per_head) scale folded into Q
    attn_w = jax.random.normal(ks[4], (TOTAL_ENC, 3 * ATTN_EMB), f32) * stdp
    attn_w = attn_w.at[:, :ATTN_EMB].multiply(1.0 / math.sqrt(EMBED))

    # fused integral + exp-smoothing value projection
    int_w = jax.random.normal(ks[5], (TOTAL_ENC, INT_EMB), f32) * stdp
    exp_w = jax.random.normal(ks[6], (TOTAL_ENC, EXP_EMB), f32) * stdp
    fix_w = jnp.concatenate([int_w, exp_w], axis=1)            # (28, 24)

    # decoder
    fc_w = jax.random.normal(ks[7], (TOTAL_EMB, DEC_HIDDEN), f32) * std
    pj_w = jax.random.normal(ks[8], (DEC_HIDDEN, OUT_DIM), f32) * stdp

    # fixed attention matrices (registered buffers of the torch module):
    # rows = [integral | exp(alpha=0.3) | exp(alpha=0.7)], each (L, L)
    L = SEQ_LENGTH
    r = jnp.arange(L, dtype=f32)[:, None]
    c = jnp.arange(L, dtype=f32)[None, :]
    tril = c <= r
    mats = [tril.astype(f32)] * N_INT_HEADS
    for alpha in EXP_WEIGHTS:
        decay = (1.0 - alpha) ** jnp.maximum(r - c, 0.0)
        denom = 1.0 - (1.0 - alpha) ** (r + 1.0)
        mats.append(jnp.where(tril, alpha * decay / denom, 0.0).astype(f32))
    fix_attn = jnp.concatenate(mats, axis=0)                   # (3L, L)

    # additive causal mask: 0 on/below diagonal, -1e30 above
    causal_add = jnp.where(tril, 0.0, NEG_BIG).astype(f32)

    # ---- pack everything into one zero-padded slab (one DMA at call time) ----
    slab = jnp.zeros((SLAB_ROWS, SLAB_COLS), f32)
    slab = slab.at[R_ENC_W:R_ENC_W + IN_DIM, :TOTAL_ENC].set(enc_w)
    slab = slab.at[R_ATTN_W:R_ATTN_W + TOTAL_ENC, :3 * ATTN_EMB].set(attn_w)
    slab = slab.at[R_FIX_W:R_FIX_W + TOTAL_ENC, :N_FIX_HEADS * EMBED].set(fix_w)
    slab = slab.at[R_FC_W:R_FC_W + TOTAL_EMB, :DEC_HIDDEN].set(fc_w)
    slab = slab.at[R_PJ_W:R_PJ_W + DEC_HIDDEN, :OUT_DIM].set(pj_w)
    slab = slab.at[R_FIXATTN:R_FIXATTN + N_FIX_HEADS * L, :L].set(fix_attn)
    slab = slab.at[R_CAUSAL:R_CAUSAL + L, :L].set(causal_add)
    # biases (zero at init, kept for checkpoint-load parity), one row each
    slab = slab.at[R_ENC_B, :TOTAL_ENC].set(jnp.zeros((TOTAL_ENC,), f32))
    slab = slab.at[R_FC_B, :DEC_HIDDEN].set(jnp.zeros((DEC_HIDDEN,), f32))
    slab = slab.at[R_PJ_B, :OUT_DIM].set(jnp.zeros((OUT_DIM,), f32))
    # NOTE: when loading trained torch checkpoints, re-apply the block-diagonal
    # fusion and the 1/sqrt(E) Q-scale fold before packing.
    return slab


# ------------------------------- wrapper ------------------------------------
def gid_encoder_forward(param_slab, obs_seq, act_seq, rew_seq, history=None):
    """Matches GIDEncoder.forward: returns (encodings (B, L, out_dim), None, None).

    For launch-overhead amortization, batch as many sequences as possible into
    one call (B is only a leading row count inside the kernel)."""
    # glue: prepend first obs, shift, transition diffs, truncate to seq_length,
    # concatenate per-step inputs into one lane-contiguous tensor.
    full_obs = jnp.concatenate([obs_seq[:, :1], obs_seq], axis=1)
    obs_s = full_obs[:, :-1][:, -SEQ_LENGTH:]
    trn_s = (full_obs[:, 1:] - full_obs[:, :-1])[:, -SEQ_LENGTH:]
    act_s = act_seq[:, -SEQ_LENGTH:]
    rew_s = rew_seq[:, -SEQ_LENGTH:]
    x_in = jnp.concatenate([obs_s, act_s, rew_s, trn_s], axis=-1)   # (B, L, 17)

    Bv, Lv, _ = x_in.shape
    # fixed attention / causal buffers are sized for SEQ_LENGTH; shorter
    # histories are not supported by this kernel.
    assert Lv == SEQ_LENGTH, (Lv, SEQ_LENGTH)
    x_flat = x_in.reshape(Bv * Lv, IN_DIM)

    vmem = pl.BlockSpec(memory_space=pltpu.MemorySpace.VMEM)
    out_flat = pl.pallas_call(
        gid_encoder_kernel,
        out_shape=jax.ShapeDtypeStruct((Bv * Lv, OUT_DIM), jnp.float32),
        in_specs=[vmem, vmem],
        out_specs=vmem,
        # tiny single-block kernel: tell XLA it is cheap so surrounding ops are
        # not serialized around it.  No grid: the BatchNorms need whole-batch
        # statistics, and total footprint (~100 KB) is irrelevant to VMEM.
        cost_estimate=pl.CostEstimate(
            flops=130_000, transcendentals=600, bytes_accessed=100_000),
    )(x_flat, param_slab)
    return out_flat.reshape(Bv, Lv, OUT_DIM), None, None


# --------------------------------- main -------------------------------------
if __name__ == "__main__":
    key = jax.random.PRNGKey(0)
    kp, ko, ka, kr = jax.random.split(key, 4)
    param_slab = init_params(kp)

    obs_seq = jax.random.normal(ko, (B, L_IN, OBS_DIM), dtype=jnp.float32)
    act_seq = jax.random.normal(ka, (B, L_IN, ACT_DIM), dtype=jnp.float32)
    rew_seq = jax.random.normal(kr, (B, L_IN, 1), dtype=jnp.float32)

    fwd = jax.jit(functools.partial(gid_encoder_forward, param_slab))
    out, _, _ = fwd(obs_seq, act_seq, rew_seq)
    out = jax.block_until_ready(out)

    assert out.shape == (B, SEQ_LENGTH, OUT_DIM), out.shape
    assert bool(jnp.all(jnp.isfinite(out)))
    # TODO(synk): RECORD_ATTENTION pickle-dump path is file I/O and intentionally omitted.
    print("KERNEL_OK")
</pallas_src>

<mosaic_0001>
module attributes {stable_mosaic.version = 11 : i64} {
  func.func @gid_encoder_kernel(%arg0: memref<16x17xf32, #tpu.memory_space<vmem>>, %arg1: memref<184x128xf32, #tpu.memory_space<vmem>>, %arg2: memref<16x10xf32, #tpu.memory_space<vmem>>) attributes {dimension_semantics = [], scalar_prefetch = 0 : i64, scratch_operands = 0 : i64, tpu.core_type = #tpu.core_type<tc>} {
    %c0 = arith.constant 0 : index
    %c0_0 = arith.constant 0 : index
    %0 = vector.load %arg1[%c0, %c0_0] : memref<184x128xf32, #tpu.memory_space<vmem>>, vector<17x28xf32>
    %c24 = arith.constant 24 : index
    %c0_1 = arith.constant 0 : index
    %1 = vector.load %arg1[%c24, %c0_1] : memref<184x128xf32, #tpu.memory_space<vmem>>, vector<28x48xf32>
    %c56 = arith.constant 56 : index
    %c0_2 = arith.constant 0 : index
    %2 = vector.load %arg1[%c56, %c0_2] : memref<184x128xf32, #tpu.memory_space<vmem>>, vector<28x24xf32>
    %c88 = arith.constant 88 : index
    %c0_3 = arith.constant 0 : index
    %3 = vector.load %arg1[%c88, %c0_3] : memref<184x128xf32, #tpu.memory_space<vmem>>, vector<40x16xf32>
    %c128 = arith.constant 128 : index
    %c0_4 = arith.constant 0 : index
    %4 = vector.load %arg1[%c128, %c0_4] : memref<184x128xf32, #tpu.memory_space<vmem>>, vector<16x10xf32>
    %c144 = arith.constant 144 : index
    %c0_5 = arith.constant 0 : index
    %5 = vector.load %arg1[%c144, %c0_5] : memref<184x128xf32, #tpu.memory_space<vmem>>, vector<24x8xf32>
    %c168 = arith.constant 168 : index
    %c0_6 = arith.constant 0 : index
    %6 = vector.load %arg1[%c168, %c0_6] : memref<184x128xf32, #tpu.memory_space<vmem>>, vector<8x8xf32>
    %c176 = arith.constant 176 : index
    %c0_7 = arith.constant 0 : index
    %7 = vector.load %arg1[%c176, %c0_7] : memref<184x128xf32, #tpu.memory_space<vmem>>, vector<1x28xf32>
    %c177 = arith.constant 177 : index
    %c0_8 = arith.constant 0 : index
    %8 = vector.load %arg1[%c177, %c0_8] : memref<184x128xf32, #tpu.memory_space<vmem>>, vector<1x16xf32>
    %c178 = arith.constant 178 : index
    %c0_9 = arith.constant 0 : index
    %9 = vector.load %arg1[%c178, %c0_9] : memref<184x128xf32, #tpu.memory_space<vmem>>, vector<1x10xf32>
    %c0_10 = arith.constant 0 : index
    %c0_11 = arith.constant 0 : index
    %10 = vector.load %arg0[%c0_10, %c0_11] : memref<16x17xf32, #tpu.memory_space<vmem>>, vector<16x17xf32>
    %cst = arith.constant dense<0.000000e+00> : vector<17xf32>
    %11 = vector.multi_reduction <add>, %10, %cst [0] : vector<16x17xf32> to vector<17xf32>
    %12 = vector.shape_cast %11 : vector<17xf32> to vector<1x17xf32>
    %cst_12 = arith.constant 1.600000e+01 : f32
    %13 = vector.broadcast %cst_12 : f32 to vector<1x17xf32>
    %14 = arith.divf %12, %13 : vector<1x17xf32>
    %15 = arith.mulf %10, %10 : vector<16x17xf32>
    %cst_13 = arith.constant dense<0.000000e+00> : vector<17xf32>
    %16 = vector.multi_reduction <add>, %15, %cst_13 [0] : vector<16x17xf32> to vector<17xf32>
    %17 = vector.shape_cast %16 : vector<17xf32> to vector<1x17xf32>
    %cst_14 = arith.constant 1.600000e+01 : f32
    %18 = vector.broadcast %cst_14 : f32 to vector<1x17xf32>
    %19 = arith.divf %17, %18 : vector<1x17xf32>
    %20 = arith.mulf %14, %14 : vector<1x17xf32>
    %21 = arith.subf %19, %20 : vector<1x17xf32>
    %22 = vector.broadcast %14 : vector<1x17xf32> to vector<16x17xf32>
    %23 = arith.subf %10, %22 : vector<16x17xf32>
    %cst_15 = arith.constant 9.99999974E-6 : f32
    %24 = vector.broadcast %cst_15 : f32 to vector<1x17xf32>
    %25 = arith.addf %21, %24 : vector<1x17xf32>
    %26 = math.rsqrt %25 : vector<1x17xf32>
    %27 = vector.broadcast %26 : vector<1x17xf32> to vector<16x17xf32>
    %28 = arith.mulf %23, %27 : vector<16x17xf32>
    %cst_16 = arith.constant dense<0.000000e+00> : vector<16x28xf32>
    %29 = tpu.matmul %28, %0, %cst_16 {dimension_numbers = #tpu.dot_dimension_numbers<[1], [0], [0], [1], [0, 0, 1, 1], [], []>} : vector<16x17xf32>, vector<17x28xf32>, vector<16x28xf32> -> vector<16x28xf32>
    %30 = vector.broadcast %7 : vector<1x28xf32> to vector<16x28xf32>
    %31 = arith.addf %29, %30 : vector<16x28xf32>
    %cst_17 = arith.constant dense<0.000000e+00> : vector<16xf32>
    %32 = vector.multi_reduction <add>, %31, %cst_17 [1] : vector<16x28xf32> to vector<16xf32>
    %33 = vector.shape_cast %32 : vector<16xf32> to vector<16x1xf32>
    %cst_18 = arith.constant 2.800000e+01 : f32
    %34 = vector.broadcast %cst_18 : f32 to vector<16x1xf32>
    %35 = arith.divf %33, %34 : vector<16x1xf32>
    %36 = arith.mulf %31, %31 : vector<16x28xf32>
    %cst_19 = arith.constant dense<0.000000e+00> : vector<16xf32>
    %37 = vector.multi_reduction <add>, %36, %cst_19 [1] : vector<16x28xf32> to vector<16xf32>
    %38 = vector.shape_cast %37 : vector<16xf32> to vector<16x1xf32>
    %cst_20 = arith.constant 2.800000e+01 : f32
    %39 = vector.broadcast %cst_20 : f32 to vector<16x1xf32>
    %40 = arith.divf %38, %39 : vector<16x1xf32>
    %41 = arith.mulf %35, %35 : vector<16x1xf32>
    %42 = arith.subf %40, %41 : vector<16x1xf32>
    %43 = vector.broadcast %35 : vector<16x1xf32> to vector<16x28xf32>
    %44 = arith.subf %31, %43 : vector<16x28xf32>
    %cst_21 = arith.constant 9.99999974E-6 : f32
    %45 = vector.broadcast %cst_21 : f32 to vector<16x1xf32>
    %46 = arith.addf %42, %45 : vector<16x1xf32>
    %47 = math.rsqrt %46 : vector<16x1xf32>
    %48 = vector.broadcast %47 : vector<16x1xf32> to vector<16x28xf32>
    %49 = arith.mulf %44, %48 : vector<16x28xf32>
    %cst_22 = arith.constant dense<0.000000e+00> : vector<16x48xf32>
    %50 = tpu.matmul %49, %1, %cst_22 {dimension_numbers = #tpu.dot_dimension_numbers<[1], [0], [0], [1], [0, 0, 1, 1], [], []>} : vector<16x28xf32>, vector<28x48xf32>, vector<16x48xf32> -> vector<16x48xf32>
    %51 = vector.shape_cast %50 : vector<16x48xf32> to vector<2x8x48xf32>
    %cst_23 = arith.constant dense<0.000000e+00> : vector<16x24xf32>
    %52 = tpu.matmul %31, %2, %cst_23 {dimension_numbers = #tpu.dot_dimension_numbers<[1], [0], [0], [1], [0, 0, 1, 1], [], []>} : vector<16x28xf32>, vector<28x24xf32>, vector<16x24xf32> -> vector<16x24xf32>
    %53 = vector.shape_cast %52 : vector<16x24xf32> to vector<2x8x24xf32>
    %54 = vector.extract_strided_slice %51 {offsets = [0, 0, 0], sizes = [2, 8, 8], strides = [1, 1, 1]} : vector<2x8x48xf32> to vector<2x8x8xf32>
    %55 = vector.extract_strided_slice %51 {offsets = [0, 0, 8], sizes = [2, 8, 8], strides = [1, 1, 1]} : vector<2x8x48xf32> to vector<2x8x8xf32>
    %56 = tpu.concatenate %54, %55 in 0 : vector<2x8x8xf32>, vector<2x8x8xf32> -> vector<4x8x8xf32>
    %57 = vector.extract_strided_slice %51 {offsets = [0, 0, 16], sizes = [2, 8, 8], strides = [1, 1, 1]} : vector<2x8x48xf32> to vector<2x8x8xf32>
    %58 = vector.extract_strided_slice %51 {offsets = [0, 0, 24], sizes = [2, 8, 8], strides = [1, 1, 1]} : vector<2x8x48xf32> to vector<2x8x8xf32>
    %59 = tpu.concatenate %57, %58 in 0 : vector<2x8x8xf32>, vector<2x8x8xf32> -> vector<4x8x8xf32>
    %60 = vector.extract_strided_slice %51 {offsets = [0, 0, 32], sizes = [2, 8, 8], strides = [1, 1, 1]} : vector<2x8x48xf32> to vector<2x8x8xf32>
    %61 = vector.extract_strided_slice %51 {offsets = [0, 0, 40], sizes = [2, 8, 8], strides = [1, 1, 1]} : vector<2x8x48xf32> to vector<2x8x8xf32>
    %62 = vector.extract_strided_slice %53 {offsets = [0, 0, 0], sizes = [2, 8, 8], strides = [1, 1, 1]} : vector<2x8x24xf32> to vector<2x8x8xf32>
    %63 = vector.extract_strided_slice %53 {offsets = [0, 0, 8], sizes = [2, 8, 8], strides = [1, 1, 1]} : vector<2x8x24xf32> to vector<2x8x8xf32>
    %64 = vector.extract_strided_slice %53 {offsets = [0, 0, 16], sizes = [2, 8, 8], strides = [1, 1, 1]} : vector<2x8x24xf32> to vector<2x8x8xf32>
    %65 = tpu.concatenate %60, %61, %62, %63, %64 in 0 : vector<2x8x8xf32>, vector<2x8x8xf32>, vector<2x8x8xf32>, vector<2x8x8xf32>, vector<2x8x8xf32> -> vector<10x8x8xf32>
    "tpu.trace_start"() <{level = 10 : i32, message = "nle,nme->nlm"}> : () -> ()
    %cst_24 = arith.constant dense<0.000000e+00> : vector<4x8x8xf32>
    %66 = tpu.matmul %56, %59, %cst_24 {dimension_numbers = #tpu.dot_dimension_numbers<[2], [2], [1], [1], [0, 0, 0, 1, 1, 1], [0], [0]>} : vector<4x8x8xf32>, vector<4x8x8xf32>, vector<4x8x8xf32> -> vector<4x8x8xf32>
    "tpu.trace_stop"() : () -> ()
    %67 = vector.shape_cast %6 : vector<8x8xf32> to vector<1x8x8xf32>
    %68 = vector.broadcast %67 : vector<1x8x8xf32> to vector<4x8x8xf32>
    %69 = arith.addf %66, %68 : vector<4x8x8xf32>
    %cst_25 = arith.constant dense<0xFF800000> : vector<4x8xf32>
    %70 = vector.multi_reduction <maximumf>, %69, %cst_25 [2] : vector<4x8x8xf32> to vector<4x8xf32>
    %71 = vector.shape_cast %70 : vector<4x8xf32> to vector<4x8x1xf32>
    %72 = vector.broadcast %71 : vector<4x8x1xf32> to vector<4x8x8xf32>
    %73 = arith.subf %69, %72 : vector<4x8x8xf32>
    %74 = math.exp %73 : vector<4x8x8xf32>
    %cst_26 = arith.constant dense<0.000000e+00> : vector<4x8xf32>
    %75 = vector.multi_reduction <add>, %74, %cst_26 [2] : vector<4x8x8xf32> to vector<4x8xf32>
    %76 = vector.shape_cast %75 : vector<4x8xf32> to vector<4x8x1xf32>
    %77 = tpu.reciprocal %76 {approx = true} : vector<4x8x1xf32> -> vector<4x8x1xf32>
    %78 = vector.broadcast %77 : vector<4x8x1xf32> to vector<4x8x8xf32>
    %79 = arith.mulf %74, %78 : vector<4x8x8xf32>
    %80 = vector.extract_strided_slice %5 {offsets = [0, 0], sizes = [8, 8], strides = [1, 1]} : vector<24x8xf32> to vector<8x8xf32>
    %81 = vector.shape_cast %80 : vector<8x8xf32> to vector<1x8x8xf32>
    %82 = vector.broadcast %81 : vector<1x8x8xf32> to vector<2x8x8xf32>
    %83 = vector.extract_strided_slice %5 {offsets = [8, 0], sizes = [8, 8], strides = [1, 1]} : vector<24x8xf32> to vector<8x8xf32>
    %84 = vector.shape_cast %83 : vector<8x8xf32> to vector<1x8x8xf32>
    %85 = vector.broadcast %84 : vector<1x8x8xf32> to vector<2x8x8xf32>
    %86 = vector.extract_strided_slice %5 {offsets = [16, 0], sizes = [8, 8], strides = [1, 1]} : vector<24x8xf32> to vector<8x8xf32>
    %87 = vector.shape_cast %86 : vector<8x8xf32> to vector<1x8x8xf32>
    %88 = vector.broadcast %87 : vector<1x8x8xf32> to vector<2x8x8xf32>
    %89 = tpu.concatenate %82, %85, %88 in 0 : vector<2x8x8xf32>, vector<2x8x8xf32>, vector<2x8x8xf32> -> vector<6x8x8xf32>
    %90 = tpu.concatenate %79, %89 in 0 : vector<4x8x8xf32>, vector<6x8x8xf32> -> vector<10x8x8xf32>
    "tpu.trace_start"() <{level = 10 : i32, message = "nlm,nme->nle"}> : () -> ()
    %cst_27 = arith.constant dense<0.000000e+00> : vector<10x8x8xf32>
    %91 = tpu.matmul %90, %65, %cst_27 {dimension_numbers = #tpu.dot_dimension_numbers<[2], [1], [1], [2], [0, 0, 0, 1, 1, 2], [0], [0]>} : vector<10x8x8xf32>, vector<10x8x8xf32>, vector<10x8x8xf32> -> vector<10x8x8xf32>
    "tpu.trace_stop"() : () -> ()
    %92 = vector.extract_strided_slice %91 {offsets = [0, 0, 0], sizes = [2, 8, 8], strides = [1, 1, 1]} : vector<10x8x8xf32> to vector<2x8x8xf32>
    %93 = vector.extract_strided_slice %91 {offsets = [2, 0, 0], sizes = [2, 8, 8], strides = [1, 1, 1]} : vector<10x8x8xf32> to vector<2x8x8xf32>
    %94 = vector.extract_strided_slice %91 {offsets = [4, 0, 0], sizes = [2, 8, 8], strides = [1, 1, 1]} : vector<10x8x8xf32> to vector<2x8x8xf32>
    %95 = vector.extract_strided_slice %91 {offsets = [6, 0, 0], sizes = [2, 8, 8], strides = [1, 1, 1]} : vector<10x8x8xf32> to vector<2x8x8xf32>
    %96 = vector.extract_strided_slice %91 {offsets = [8, 0, 0], sizes = [2, 8, 8], strides = [1, 1, 1]} : vector<10x8x8xf32> to vector<2x8x8xf32>
    %97 = tpu.concatenate %92, %93, %94, %95, %96 in 2 : vector<2x8x8xf32>, vector<2x8x8xf32>, vector<2x8x8xf32>, vector<2x8x8xf32>, vector<2x8x8xf32> -> vector<2x8x40xf32>
    %98 = vector.shape_cast %97 : vector<2x8x40xf32> to vector<16x40xf32>
    %cst_28 = arith.constant dense<0.000000e+00> : vector<40xf32>
    %99 = vector.multi_reduction <add>, %98, %cst_28 [0] : vector<16x40xf32> to vector<40xf32>
    %100 = vector.shape_cast %99 : vector<40xf32> to vector<1x40xf32>
    %cst_29 = arith.constant 1.600000e+01 : f32
    %101 = vector.broadcast %cst_29 : f32 to vector<1x40xf32>
    %102 = arith.divf %100, %101 : vector<1x40xf32>
    %103 = arith.mulf %98, %98 : vector<16x40xf32>
    %cst_30 = arith.constant dense<0.000000e+00> : vector<40xf32>
    %104 = vector.multi_reduction <add>, %103, %cst_30 [0] : vector<16x40xf32> to vector<40xf32>
    %105 = vector.shape_cast %104 : vector<40xf32> to vector<1x40xf32>
    %cst_31 = arith.constant 1.600000e+01 : f32
    %106 = vector.broadcast %cst_31 : f32 to vector<1x40xf32>
    %107 = arith.divf %105, %106 : vector<1x40xf32>
    %108 = arith.mulf %102, %102 : vector<1x40xf32>
    %109 = arith.subf %107, %108 : vector<1x40xf32>
    %110 = vector.broadcast %102 : vector<1x40xf32> to vector<16x40xf32>
    %111 = arith.subf %98, %110 : vector<16x40xf32>
    %cst_32 = arith.constant 9.99999974E-6 : f32
    %112 = vector.broadcast %cst_32 : f32 to vector<1x40xf32>
    %113 = arith.addf %109, %112 : vector<1x40xf32>
    %114 = math.rsqrt %113 : vector<1x40xf32>
    %115 = vector.broadcast %114 : vector<1x40xf32> to vector<16x40xf32>
    %116 = arith.mulf %111, %115 : vector<16x40xf32>
    %cst_33 = arith.constant dense<0.000000e+00> : vector<16x16xf32>
    %117 = tpu.matmul %116, %3, %cst_33 {dimension_numbers = #tpu.dot_dimension_numbers<[1], [0], [0], [1], [0, 0, 1, 1], [], []>} : vector<16x40xf32>, vector<40x16xf32>, vector<16x16xf32> -> vector<16x16xf32>
    %118 = vector.broadcast %8 : vector<1x16xf32> to vector<16x16xf32>
    %119 = arith.addf %117, %118 : vector<16x16xf32>
    %cst_34 = arith.constant 0.000000e+00 : f32
    %120 = vector.broadcast %cst_34 : f32 to vector<16x16xf32>
    %121 = arith.maximumf %119, %120 : vector<16x16xf32>
    %cst_35 = arith.constant dense<0.000000e+00> : vector<16x10xf32>
    %122 = tpu.matmul %121, %4, %cst_35 {dimension_numbers = #tpu.dot_dimension_numbers<[1], [0], [0], [1], [0, 0, 1, 1], [], []>} : vector<16x16xf32>, vector<16x10xf32>, vector<16x10xf32> -> vector<16x10xf32>
    %123 = vector.broadcast %9 : vector<1x10xf32> to vector<16x10xf32>
    %124 = arith.addf %122, %123 : vector<16x10xf32>
    %125 = math.tanh %124 : vector<16x10xf32>
    %c0_36 = arith.constant 0 : index
    %c0_37 = arith.constant 0 : index
    %126 = vector.load %arg2[%c0_36, %c0_37] : memref<16x10xf32, #tpu.memory_space<vmem>>, vector<16x10xf32>
    tpu.vector_store %arg2[%c0_36, %c0_37], %125 {strides = array<i32>} : memref<16x10xf32, #tpu.memory_space<vmem>>, vector<16x10xf32>,
    return
  }
}

</mosaic_0001>

<bundles_post_ra>
// kernel: gid_encoder_forward.1
= control target key start
LH: loop header
LB: loop body
LE: loop exit
PB: predicated region body
PF: predicated region fallthrough
CT: control target
= control target key end

     0   :  { %vm81_vm0 = vcmask 1040384   ;;  %vm39_vm1 = vcmask 138240   ;;  %s2259_s0 = inlined_call_operand.vmem [shape: f32[16,17], index: 0, kind: input, shape index: {}]   ;;  %s2260_s1 = inlined_call_operand.vmem [shape: f32[184,128], index: 1, kind: input, shape index: {}]   ;;  %s2261_s2 = inlined_call_operand.hbm [shape: f32[16,10], index: 2, kind: output, shape index: {}]  }
   0x1   :  { %v14_v0 = vld [vmem:[%s2260_s1 + $0x10] sm:$0x1]  ;;  %v13_v1 = vld [vmem:[%s2260_s1 + $0x8] sm:$0xff]  ;;  %v37_v2 = vld [vmem:[%s2259_s0] sm:$0xff] }
   0x2   :  { %1838 = vmatprep.subr.msk.mxu0 %vm81_vm0, %v14_v0  ;;  %v38_v3 = vld [vmem:[%s2259_s0 + $0x8] sm:$0xff]  ;;  %v12_v4 = vld [vmem:[%s2260_s1] sm:$0xff]  ;;  %v40_v5 = vsel %vm39_vm1, %v37_v2, 0.0  ;;  %v51_v7 = vmul.f32 %v37_v2, %v37_v2 }
   0x3   :  { %1839 = vmatpush3.msk.msra.mxu0 %vm81_vm0, %v14_v0  ;;  %v41_v6 = vsel %vm39_vm1, %v38_v3, 0.0  ;;  %v52_v8 = vmul.f32 %v38_v3, %v38_v3 }
   0x4   :  { %7 = vsyncpa [#allocation3], 0  ;;  %1840 = vmatprep.subr.mxu0 %v13_v1  ;;  %v42_v9 = vadd.f32 %v41_v6, %v40_v5  ;;  %v53_v10 = vsel %vm39_vm1, %v51_v7, 0.0  ;;  %v22_v12 = vld [vmem:[%s2260_s1 + $0x50] sm:$0xf]  ;;  %vm198_vm2 = vcmask 1043456  }
   0x5   :  { %1841 = vmatpush3.msra.mxu0 %v13_v1  ;;  %v54_v11 = vsel %vm39_vm1, %v52_v8, 0.0  ;;  %v21_v36 = vld [vmem:[%s2260_s1 + $0x48] sm:$0xff]  ;;  %v20_v37 = vld [vmem:[%s2260_s1 + $0x40] sm:$0xff]  ;;  %v19_v38 = vld [vmem:[%s2260_s1 + $0x38] sm:$0xff]  ;;  %vm160_vm3 = vcmask 228352   ;;  %vm2021_vm4 = vmmov 0  }
   0x6   :  { %1842 = vmatprep.subr.mxu0 %v12_v4  ;;  %v43_v13 = vrot.slane %v42_v9, 4  ;;  %v55_v14 = vadd.f32 %v54_v11, %v53_v10  ;;  %v1748_v40 = vld [vmem:[%s2260_s1 + $0xb0] ss:$0 sm:$0xff]  ;;  %v17_v51 = vld [vmem:[%s2260_s1 + $0x28] sm:$0xff]  ;;  %v16_v52 = vld [vmem:[%s2260_s1 + $0x20] sm:$0xff]  ;;  %v2020_v10 = vmov 0.0  }
   0x7   :  { %1843 = vmatpush3.msra.mxu0 %v12_v4  ;;  %v18_v50 = vld [vmem:[%s2260_s1 + $0x30] sm:$0xf]  ;;  %v15_v53 = vld [vmem:[%s2260_s1 + $0x18] sm:$0xff]  ;;  %s2022_s8 = smov 120   ;;  %s2023_s9 = smov 112   ;;  %vm383_vm5 = vcmask 64512  }
   0x8   :  { %v44_v15 = vadd.f32 %v43_v13, %v42_v9  ;;  %v56_v16 = vrot.slane %v55_v14, 4  ;;  %1858 = vmatprep.subr.msk.mxu0 %vm198_vm2, %v22_v12  ;;  %1847 = vmatprep.subr.msk.mxu1 %vm198_vm2, %v18_v50  ;;  %s2024_s12 = smov 32   ;;  %s2025_s13 = smov 24   ;;  %vm1515_vm6 = vcmask 130048   ;;  %vm1518_vm7 = vcmask 195584  }
   0x9   :  { %1848 = vmatpush3.msk.msra.mxu1 %vm198_vm2, %v18_v50  ;;  %s2026_s14 = smov 16   ;;  %s2027_s15 = smov 96   ;;  %vm1521_vm8 = vcmask 261120   ;;  %vm1524_vm9 = vcmask 326656   ;;  %vm1729_vm10 = vcmask 80896  }
   0xa   :  { %v45_v17 = vrot.slane %v44_v15, 2  ;;  %v57_v18 = vadd.f32 %v56_v16, %v55_v14  ;;  %1849 = vmatprep.subr.mxu1 %v17_v51  ;;  %s2028_s21 = smov 8  }
   0xb   :  { %1850 = vmatpush3.msra.mxu1 %v17_v51 }
   0xc   :  { %v46_v19 = vadd.f32 %v45_v17, %v44_v15  ;;  %v58_v20 = vrot.slane %v57_v18, 2  ;;  %1851 = vmatprep.subr.mxu1 %v16_v52 }
   0xd   :  { %1852 = vmatpush3.msra.mxu1 %v16_v52 }
   0xe   :  { %v47_v21 = vrot.slane %v46_v19, 1  ;;  %v59_v22 = vadd.f32 %v58_v20, %v57_v18  ;;  %1853 = vmatprep.subr.mxu1 %v15_v53 }
   0xf   :  { %1854 = vmatpush3.msra.mxu1 %v15_v53 }
  0x10   :  { %v48_v23 = vadd.f32 %v47_v21, %v46_v19  ;;  %v60_v24 = vrot.slane %v59_v22, 1  ;;  %1869 = vmatprep.subr.mxu1 %v2020_v10  ;;  %v33_v19 = vld [vmem:[%s2260_s1 + $0xa8] sm:$0xff] }
  0x12   :  { %v50_v25 = vmul.f32 0.0625, %v48_v23  ;;  %v61_v26 = vadd.f32 %v60_v24, %v59_v22 }
  0x14   :  { %v62_v27 = vmul.f32 0.0625, %v61_v26  ;;  %v63_v28 = vmul.f32 %v50_v25, %v50_v25  ;;  %v65_v31 = vsub.f32 %v37_v2, %v50_v25  ;;  %v66_v32 = vsub.f32 %v38_v3, %v50_v25 }
  0x16   :  { %v64_v29 = vsub.f32 %v62_v27, %v63_v28 }
  0x18   :  { %v67_v30 = vadd.f32 1e-05, %v64_v29 }
  0x1a   :  { %1970 = vrsqrt.f32 %v67_v30 }
  0x27   :  { %v1971_v33 = vpop.eup %1970 }
  0x28   :  { %v69_v34 = vmul.f32 %v1971_v33, %v65_v31  ;;  %v70_v35 = vmul.f32 %v1971_v33, %v66_v32 }
  0x2a   :  { %1844 = vmatprep.mubr.msk.f32.mxu0 %vm39_vm1, %v69_v34 }
  0x2b   :  { %1845 = vmatmul.mubr.msk.f32.vlgmr.msra.gmra.mxu0 %vm39_vm1, %v70_v35 }
  0x2c   :  { %1859 = vmatpush3.msk.msra.mxu0 %vm198_vm2, %v22_v12 }
  0x2d   :  { %1860 = vmatprep.subr.mxu0 %v21_v36 }
  0x2e   :  { %1861 = vmatpush3.msra.mxu0 %v21_v36 }
  0x2f   :  { %1862 = vmatprep.subr.mxu0 %v20_v37 }
  0x30   :  { %1863 = vmatpush3.msra.mxu0 %v20_v37 }
  0x31   :  { %1864 = vmatprep.subr.mxu0 %v19_v38 }
  0x32   :  { %1865 = vmatpush3.msra.mxu0 %v19_v38 }
  0x33   :  { %1879 = vmatprep.subr.mxu0 %v2020_v10 }
  0xeb   :  { %v1846_v39 = vpop.f32.mrf.mxu0 }
  0xec   :  { %v157_v42 = vadd.f32 %v1846_v39, %v1748_v40 }
  0xed   :  { %v151_v41 = vpop.f32.mrf.mxu0 }
  0xee   :  { %v152_v43 = vadd.f32 %v1748_v40, %v151_v41  ;;  %v171_v47 = vmul.f32 %v157_v42, %v157_v42  ;;  %v164_v48 = vsel %vm160_vm3, %v157_v42, 0.0 }
  0xf0   :  { %1866 = vmatprep.mubr.msk.f32.mxu0 %vm160_vm3, %v152_v43  ;;  %v161_v44 = vsel %vm160_vm3, %v152_v43, 0.0  ;;  %v170_v45 = vmul.f32 %v152_v43, %v152_v43  ;;  %v175_v49 = vsel %vm160_vm3, %v171_v47, 0.0 }
  0xf1   :  { %1867 = vmatmul.mubr.msk.f32.vlgmr.msra.gmra.mxu0 %vm160_vm3, %v157_v42  ;;  %162 = vadd.xlane.f32.xlu0 %v161_v44 }
  0xf2   :  { %v172_v46 = vsel %vm160_vm3, %v170_v45, 0.0  ;;  %1881 = vmatprep.mubr.msk.f32.mxu0 %vm2021_vm4, %v2020_v10 }
  0xf3   :  { %173 = vadd.xlane.f32.xlu1 %v172_v46 }
  0xf5   :  { %165 = vadd.xlane.f32.xlu0 %v164_v48 }
  0xf7   :  { %176 = vadd.xlane.f32.xlu1 %v175_v49 }
 0x17a   :  { %v163_v54 = vpop.xlane.xlu0 %162 }
 0x17b   :  { %v168_v55 = vmul.f32 0.035714287, %v163_v54 }
 0x17c   :  { %v174_v56 = vpop.xlane.xlu1 %173 }
 0x17d   :  { %v180_v57 = vmul.f32 %v168_v55, %v168_v55  ;;  %v178_v58 = vmul.f32 0.035714287, %v174_v56  ;;  %v184_v4 = vsub.f32 %v152_v43, %v168_v55 }
 0x17e   :  { %v166_v59 = vpop.xlane.xlu0 %165 }
 0x17f   :  { %v182_v60 = vsub.f32 %v178_v58, %v180_v57  ;;  %v169_v61 = vmul.f32 0.035714287, %v166_v59 }
 0x180   :  { %v177_v62 = vpop.xlane.xlu1 %176 }
 0x181   :  { %v186_v63 = vadd.f32 1e-05, %v182_v60  ;;  %v181_v0 = vmul.f32 %v169_v61, %v169_v61  ;;  %v179_v1 = vmul.f32 0.035714287, %v177_v62  ;;  %v185_v7 = vsub.f32 %v157_v42, %v169_v61 }
 0x183   :  { %1972 = vrsqrt.f32 %v186_v63  ;;  %v183_v2 = vsub.f32 %v179_v1, %v181_v0 }
 0x185   :  { %v187_v3 = vadd.f32 1e-05, %v183_v2 }
 0x187   :  { %1974 = vrsqrt.f32 %v187_v3 }
 0x190   :  { %v1973_v5 = vpop.eup %1972 }
 0x191   :  { %v190_v6 = vmul.f32 %v1973_v5, %v184_v4 }
 0x193   :  { %1855 = vmatprep.mubr.msk.f32.mxu1 %vm160_vm3, %v190_v6 }
 0x194   :  { %v1975_v8 = vpop.eup %1974 }
 0x195   :  { %v191_v9 = vmul.f32 %v1975_v8, %v185_v7 }
 0x197   :  { %1856 = vmatmul.mubr.msk.f32.vlgmr.msra.gmra.mxu1 %vm160_vm3, %v191_v9 }
 0x198   :  { %1871 = vmatprep.mubr.msk.f32.mxu1 %vm2021_vm4, %v2020_v10 }
 0x1b1   :  { %v1868_v28 = vpop.f32.mrf.mxu0 }
 0x1b3   :  { %v352_v29 = vpop.f32.mrf.mxu0 }
 0x257   :  { %v1857_v11 = vpop.f32.mrf.mxu1 }
 0x258   :  { %365 = vrot.lane.b32.xlu1 %v1857_v11, %s2022_s8 }
 0x259   :  { %v2112_v12 = vpop.f32.mrf.mxu1 }
 0x25a   :  { %363 = vrot.lane.b32.xlu0 %v2112_v12, %s2022_s8 }
 0x25c   :  { %381 = vrot.lane.b32.xlu1 %v2112_v12, %s2023_s9 }
 0x260   :  { %458 = vrot.lane.b32.xlu1 %v1857_v11, %s2023_s9 }
 0x2ca   :  { %v366_v13 = vpop.permute.xlu1 %365 }
 0x2cb   :  { %610 = vrot.lane.b32.xlu1 %v366_v13, %s2023_s9 }
 0x2cc   :  { %v364_v14 = vpop.permute.xlu0 %363 }
 0x2cd   :  { %534 = vrot.lane.b32.xlu0 %v364_v14, %s2023_s9 }
 0x2ce   :  { %v382_v15 = vpop.permute.xlu1 %381 }
 0x2cf   :  { %1870 = vmatpush3.xpose.msk.msra.mxu1 %vm383_vm5, %v382_v15 }
 0x2d0   :  { %1874 = vmatprep.subr.mxu1 %v2020_v10 }
 0x2d2   :  { %1872 = vmatmul.mubr.msk.f32.vlgmr.msra.gmra.mxu1 %vm383_vm5, %v2112_v12  ;;  %v459_v16 = vpop.permute.xlu1 %458 }
 0x2d3   :  { %1875 = vmatpush3.xpose.msk.msra.mxu1 %vm383_vm5, %v459_v16  ;;  %1876 = vmatprep.mubr.msk.f32.mxu1 %vm2021_vm4, %v2020_v10 }
 0x2d4   :  { %1884 = vmatprep.subr.mxu1 %v2020_v10 }
 0x2d6   :  { %1877 = vmatmul.mubr.msk.f32.vlgmr.msra.gmra.mxu1 %vm383_vm5, %v1857_v11 }
 0x2d7   :  { %1886 = vmatprep.mubr.msk.f32.mxu1 %vm2021_vm4, %v2020_v10 }
 0x33d   :  { %v611_v17 = vpop.permute.xlu1 %610 }
 0x33e   :  { %1885 = vmatpush3.xpose.msk.msra.mxu1 %vm383_vm5, %v611_v17 }
 0x33f   :  { %v535_v18 = vpop.permute.xlu0 %534  ;;  %1894 = vmatprep.subr.mxu1 %v2020_v10 }
 0x340   :  { %1880 = vmatpush3.xpose.msk.msra.mxu0 %vm383_vm5, %v535_v18  ;;  %v30_v18 = vld [vmem:[%s2260_s1 + $0x90] sm:$0xff] }
 0x341   :  { %1887 = vmatmul.mubr.msk.f32.vlgmr.msra.gmra.mxu1 %vm383_vm5, %v366_v13  ;;  %1889 = vmatprep.subr.mxu0 %v2020_v10 }
 0x342   :  { %1896 = vmatprep.mubr.msk.f32.mxu1 %vm2021_vm4, %v2020_v10 }
 0x343   :  { %1882 = vmatmul.mubr.msk.f32.vlgmr.msra.gmra.mxu0 %vm383_vm5, %v364_v14 }
 0x344   :  { %1891 = vmatprep.mubr.msk.f32.mxu0 %vm2021_vm4, %v2020_v10 }
 0x392   :  { %v454_v20 = vpop.f32.mrf.mxu1 }
 0x393   :  { %v455_v21 = vadd.f32 %v454_v20, %v33_v19 }
 0x394   :  { %v1873_v22 = vpop.f32.mrf.mxu1 }
 0x395   :  { %v686_v23 = vsel %vm383_vm5, %v455_v21, -inf }
 0x396   :  { %v530_v24 = vpop.f32.mrf.mxu1  ;;  %687 = vmax.xlane.f32.xlu0 %v686_v23 }
 0x397   :  { %v531_v25 = vadd.f32 %v530_v24, %v33_v19  ;;  %v32_v24 = vld [vmem:[%s2260_s1 + $0xa0] sm:$0xff] }
 0x398   :  { %v1878_v26 = vpop.f32.mrf.mxu1 }
 0x399   :  { %v689_v27 = vsel %vm383_vm5, %v531_v25, -inf }
 0x39a   :  { %690 = vmax.xlane.f32.xlu1 %v689_v27 }
 0x3ab   :  { %371 = vrot.lane.b32.xlu1 %v1868_v28, %s2024_s12 }
 0x3af   :  { %373 = vrot.lane.b32.xlu1 %v352_v29, %s2025_s13 }
 0x3b3   :  { %375 = vrot.lane.b32.xlu1 %v1868_v28, %s2025_s13 }
 0x3b7   :  { %379 = vrot.lane.b32.xlu1 %v1868_v28, %s2026_s14 }
 0x3bb   :  { %806 = vrot.lane.b32.xlu1 %v1857_v11, %s2027_s15 }
 0x3bf   :  { %882 = vrot.lane.b32.xlu1 %v364_v14, %s2027_s15 }
 0x3c3   :  { %958 = vrot.lane.b32.xlu1 %v366_v13, %s2027_s15 }
 0x401   :  { %v682_v30 = vpop.f32.mrf.mxu1 }
 0x402   :  { %v683_v35 = vadd.f32 %v682_v30, %v33_v19 }
 0x403   :  { %v606_v31 = vpop.f32.mrf.mxu0  ;;  %v1888_v32 = vpop.f32.mrf.mxu1 }
 0x404   :  { %v607_v33 = vadd.f32 %v606_v31, %v33_v19  ;;  %v695_v37 = vsel %vm383_vm5, %v683_v35, -inf }
 0x405   :  { %v1883_v34 = vpop.f32.mrf.mxu0 }
 0x406   :  { %v692_v36 = vsel %vm383_vm5, %v607_v33, -inf }
 0x407   :  { %693 = vmax.xlane.f32.xlu0 %v692_v36 }
 0x40b   :  { %696 = vmax.xlane.f32.xlu0 %v695_v37 }
 0x41f   :  { %v688_v43 = vpop.xlane.xlu0 %687 }
 0x420   :  { %v698_v44 = vsub.f32 %v455_v21, %v688_v43  ;;  %v31_v21 = vld [vmem:[%s2260_s1 + $0x98] sm:$0xff] }
 0x421   :  { %369 = vrot.lane.b32.xlu0 %v352_v29, %s2024_s12 }
 0x422   :  { %v702_v46 = vmul.f32 1.442695, %v698_v44 }
 0x423   :  { %v691_v38 = vpop.xlane.xlu1 %690 }
 0x424   :  { %v699_v39 = vsub.f32 %v531_v25, %v691_v38 }
 0x425   :  { %377 = vrot.lane.b32.xlu0 %v352_v29, %s2026_s14 }
 0x426   :  { %v704_v40 = vmul.f32 1.442695, %v699_v39 }
 0x427   :  { %v372_v41 = vpop.permute.xlu1 %371 }
 0x428   :  { %1976 = vpow2.f32 %v704_v40 }
 0x429   :  { %730 = vrot.lane.b32.xlu0 %v2112_v12, %s2027_s15  ;;  %1978 = vpow2.f32 %v702_v46  ;;  %v26_v46 = vld [vmem:[%s2260_s1 + $0x70] sm:$0xff] }
 0x42b   :  { %v374_v42 = vpop.permute.xlu1 %373 }
 0x42f   :  { %v376_v45 = vpop.permute.xlu1 %375 }
 0x433   :  { %v380_v47 = vpop.permute.xlu1 %379 }
 0x435   :  { %v1977_v48 = vpop.eup %1976 }
 0x436   :  { %v713_v49 = vsel %vm383_vm5, %v1977_v48, 0.0  ;;  %v1979_v51 = vpop.eup %1978 }
 0x437   :  { %v807_v50 = vpop.permute.xlu1 %806  ;;  %714 = vadd.xlane.f32.xlu1 %v713_v49  ;;  %v710_v52 = vsel %vm383_vm5, %v1979_v51, 0.0  ;;  %v23_v49 = vld [vmem:[%s2260_s1 + $0x58] sm:$0xff] }
 0x438   :  { %1895 = vmatpush3.msra.mxu1 %v807_v50 }
 0x439   :  { %1904 = vmatprep.subr.mxu1 %v2020_v10 }
 0x43b   :  { %v883_v2 = vpop.permute.xlu1 %882 }
 0x43f   :  { %v959_v3 = vpop.permute.xlu1 %958 }
 0x448   :  { %1110 = vrot.lane.b32.xlu1 %v372_v41, %s2027_s15  ;;  %711 = vadd.xlane.f32.xlu0 %v710_v52 }
 0x44c   :  { %1259 = vrot.lane.b32.xlu1 %v376_v45, %s2027_s15  ;;  %v27_v45 = vld [vmem:[%s2260_s1 + $0x78] sm:$0xff] }
 0x450   :  { %1408 = vrot.lane.b32.xlu1 %v380_v47, %s2027_s15  ;;  %v25_v47 = vld [vmem:[%s2260_s1 + $0x68] sm:$0xff] }
 0x490   :  { %v694_v53 = vpop.xlane.xlu0 %693 }
 0x491   :  { %v700_v54 = vsub.f32 %v607_v33, %v694_v53 }
 0x493   :  { %v706_v57 = vmul.f32 1.442695, %v700_v54 }
 0x494   :  { %v697_v55 = vpop.xlane.xlu0 %696 }
 0x495   :  { %v701_v56 = vsub.f32 %v683_v35, %v697_v55 }
 0x497   :  { %v708_v58 = vmul.f32 1.442695, %v701_v56 }
 0x498   :  { %v370_v59 = vpop.permute.xlu0 %369 }
 0x499   :  { %1980 = vpow2.f32 %v708_v58 }
 0x49a   :  { %1982 = vpow2.f32 %v706_v57 }
 0x49c   :  { %v378_v60 = vpop.permute.xlu0 %377 }
 0x4a0   :  { %v731_v61 = vpop.permute.xlu0 %730 }
 0x4a1   :  { %1890 = vmatpush3.msra.mxu0 %v731_v61 }
 0x4a2   :  { %1899 = vmatprep.subr.mxu0 %v2020_v10 }
 0x4a6   :  { %v1981_v62 = vpop.eup %1980 }
 0x4a7   :  { %v719_v63 = vsel %vm383_vm5, %v1981_v62, 0.0  ;;  %v1983_v0 = vpop.eup %1982 }
 0x4a8   :  { %720 = vadd.xlane.f32.xlu0 %v719_v63  ;;  %v716_v1 = vsel %vm383_vm5, %v1983_v0, 0.0 }
 0x4ac   :  { %717 = vadd.xlane.f32.xlu0 %v716_v1 }
 0x4c0   :  { %v715_v4 = vpop.xlane.xlu1 %714 }
 0x4c1   :  { %1984 = vrcp.f32 %v715_v4 }
 0x4c2   :  { %1034 = vrot.lane.b32.xlu0 %v370_v59, %s2027_s15 }
 0x4c4   :  { %v1111_v13 = vpop.permute.xlu1 %1110 }
 0x4c6   :  { %1183 = vrot.lane.b32.xlu0 %v374_v42, %s2027_s15 }
 0x4c8   :  { %v1260_v19 = vpop.permute.xlu1 %1259 }
 0x4ca   :  { %1332 = vrot.lane.b32.xlu0 %v378_v60, %s2027_s15 }
 0x4cc   :  { %v1409_v23 = vpop.permute.xlu1 %1408 }
 0x4ce   :  { %v1985_v5 = vpop.eup %1984 }
 0x4cf   :  { %v727_v6 = vmul.f32 %v1985_v5, %v1977_v48  ;;  %v24_v48 = vld [vmem:[%s2260_s1 + $0x60] sm:$0xff] }
 0x4d1   :  { %1897 = vmatmul.mubr.msk.f32.vlgmr.msra.gmra.mxu1 %vm383_vm5, %v727_v6  ;;  %v712_v7 = vpop.xlane.xlu0 %711 }
 0x4d2   :  { %1905 = vmatpush3.msra.mxu1 %v959_v3  ;;  %1986 = vrcp.f32 %v712_v7  ;;  %1906 = vmatprep.mubr.msk.f32.mxu1 %vm2021_vm4, %v2020_v10 }
 0x4d3   :  { %1914 = vmatprep.subr.mxu1 %v2020_v10 }
 0x4df   :  { %v1987_v8 = vpop.eup %1986 }
 0x4e0   :  { %v726_v9 = vmul.f32 %v1987_v8, %v1979_v51 }
 0x4e2   :  { %1892 = vmatmul.mubr.msk.f32.vlgmr.msra.gmra.mxu0 %vm383_vm5, %v726_v9 }
 0x4e3   :  { %1900 = vmatpush3.msra.mxu0 %v883_v2  ;;  %1901 = vmatprep.mubr.msk.f32.mxu0 %vm2021_vm4, %v2020_v10 }
 0x4e4   :  { %1909 = vmatprep.subr.mxu0 %v2020_v10 }
 0x531   :  { %v721_v11 = vpop.xlane.xlu0 %720 }
 0x532   :  { %1988 = vrcp.f32 %v721_v11 }
 0x535   :  { %v718_v12 = vpop.xlane.xlu0 %717 }
 0x536   :  { %1990 = vrcp.f32 %v718_v12 }
 0x539   :  { %v1035_v16 = vpop.permute.xlu0 %1034 }
 0x53d   :  { %v1184_v22 = vpop.permute.xlu0 %1183 }
 0x53f   :  { %v1989_v14 = vpop.eup %1988 }
 0x540   :  { %v729_v15 = vmul.f32 %v1989_v14, %v1981_v62 }
 0x541   :  { %v1333_v25 = vpop.permute.xlu0 %1332 }
 0x542   :  { %1907 = vmatmul.mubr.msk.f32.vlgmr.msra.gmra.mxu1 %vm383_vm5, %v729_v15 }
 0x543   :  { %v1991_v17 = vpop.eup %1990  ;;  %1915 = vmatpush3.msra.mxu1 %v1111_v13  ;;  %1916 = vmatprep.mubr.msk.f32.mxu1 %vm2021_vm4, %v2020_v10 }
 0x544   :  { %1924 = vmatprep.subr.mxu1 %v2020_v10  ;;  %v728_v20 = vmul.f32 %v1991_v17, %v1983_v0 }
 0x546   :  { %1902 = vmatmul.mubr.msk.f32.vlgmr.msra.gmra.mxu0 %vm383_vm5, %v728_v20  ;;  %1917 = vmatmul.mubr.msk.f32.vlgmr.msra.gmra.mxu1 %vm383_vm5, %v30_v18 }
 0x547   :  { %1910 = vmatpush3.msra.mxu0 %v1035_v16  ;;  %1925 = vmatpush3.msra.mxu1 %v1260_v19 }
 0x548   :  { %1911 = vmatprep.mubr.msk.f32.mxu0 %vm2021_vm4, %v2020_v10  ;;  %1919 = vmatprep.subr.mxu0 %v2020_v10 }
 0x549   :  { %1926 = vmatprep.mubr.msk.f32.mxu1 %vm2021_vm4, %v2020_v10  ;;  %1934 = vmatprep.subr.mxu1 %v2020_v10 }
 0x54a   :  { %1912 = vmatmul.mubr.msk.f32.vlgmr.msra.gmra.mxu0 %vm383_vm5, %v30_v18  ;;  %1927 = vmatmul.mubr.msk.f32.vlgmr.msra.gmra.mxu1 %vm383_vm5, %v31_v21 }
 0x54b   :  { %1920 = vmatpush3.msra.mxu0 %v1184_v22  ;;  %1935 = vmatpush3.msra.mxu1 %v1409_v23 }
 0x54c   :  { %1921 = vmatprep.mubr.msk.f32.mxu0 %vm2021_vm4, %v2020_v10  ;;  %1929 = vmatprep.subr.mxu0 %v2020_v10 }
 0x54d   :  { %1936 = vmatprep.mubr.msk.f32.mxu1 %vm2021_vm4, %v2020_v10 }
 0x54e   :  { %1922 = vmatmul.mubr.msk.f32.vlgmr.msra.gmra.mxu0 %vm383_vm5, %v31_v21  ;;  %1937 = vmatmul.mubr.msk.f32.vlgmr.msra.gmra.mxu1 %vm383_vm5, %v32_v24 }
 0x54f   :  { %1930 = vmatpush3.msra.mxu0 %v1333_v25  ;;  %1931 = vmatprep.mubr.msk.f32.mxu0 %vm2021_vm4, %v2020_v10 }
 0x550   :  { %1939 = vmatprep.subr.mxu0 %v27_v45 }
 0x552   :  { %1932 = vmatmul.mubr.msk.f32.vlgmr.msra.gmra.mxu0 %vm383_vm5, %v32_v24 }
 0x553   :  { %1940 = vmatpush3.msra.mxu0 %v27_v45 }
 0x554   :  { %1941 = vmatprep.subr.mxu0 %v26_v46 }
 0x555   :  { %1942 = vmatpush3.msra.mxu0 %v26_v46 }
 0x556   :  { %1943 = vmatprep.subr.mxu0 %v25_v47 }
 0x557   :  { %1944 = vmatpush3.msra.mxu0 %v25_v47 }
 0x558   :  { %1945 = vmatprep.subr.mxu0 %v24_v48 }
 0x559   :  { %1946 = vmatpush3.msra.mxu0 %v24_v48 }
 0x55a   :  { %1947 = vmatprep.subr.mxu0 %v23_v49 }
 0x55b   :  { %1948 = vmatpush3.msra.mxu0 %v23_v49 }
 0x591   :  { %v878_v26 = vpop.f32.mrf.mxu1 }
 0x593   :  { %v1898_v27 = vpop.f32.mrf.mxu1 }
 0x5a2   :  { %v802_v28 = vpop.f32.mrf.mxu0 }
 0x5a4   :  { %v1893_v29 = vpop.f32.mrf.mxu0 }
 0x602   :  { %v1030_v30 = vpop.f32.mrf.mxu1 }
 0x603   :  { %1485 = vrot.lane.b32.xlu1 %v1030_v30, %s2028_s21 }
 0x604   :  { %v1908_v31 = vpop.f32.mrf.mxu1 }
 0x606   :  { %v954_v32 = vpop.f32.mrf.mxu0  ;;  %v1179_v33 = vpop.f32.mrf.mxu1 }
 0x607   :  { %1493 = vrot.lane.b32.xlu1 %v1179_v33, %s2026_s14  ;;  %1483 = vrot.lane.b32.xlu0 %v954_v32, %s2028_s21  ;;  %v29_v33 = vld [vmem:[%s2260_s1 + $0x88] sm:$0xff] }
 0x608   :  { %v1903_v34 = vpop.f32.mrf.mxu0  ;;  %v1918_v35 = vpop.f32.mrf.mxu1  ;;  %1952 = vmatprep.subr.mxu1 %v29_v33 }
 0x609   :  { %v28_v34 = vld [vmem:[%s2260_s1 + $0x80] sm:$0xff]  ;;  %1953 = vmatpush3.msra.mxu1 %v29_v33  ;;  %v1776_v35 = vld [vmem:[%s2260_s1 + $0xb1] ss:$0 sm:$0xff] }
 0x60a   :  { %v1106_v10 = vpop.f32.mrf.mxu0  ;;  %v1328_v36 = vpop.f32.mrf.mxu1  ;;  %1954 = vmatprep.subr.mxu1 %v28_v34 }
 0x60b   :  { %1501 = vrot.lane.b32.xlu1 %v1328_v36, %s2025_s13  ;;  %1491 = vrot.lane.b32.xlu0 %v1106_v10, %s2026_s14 }
 0x60c   :  { %v1913_v37 = vpop.f32.mrf.mxu0  ;;  %v1928_v38 = vpop.f32.mrf.mxu1  ;;  %1955 = vmatpush3.msra.mxu1 %v28_v34 }
 0x60e   :  { %v1255_v39 = vpop.f32.mrf.mxu0  ;;  %v1477_v40 = vpop.f32.mrf.mxu1 }
 0x60f   :  { %1509 = vrot.lane.b32.xlu1 %v1477_v40, %s2024_s12  ;;  %1499 = vrot.lane.b32.xlu0 %v1255_v39, %s2025_s13 }
 0x610   :  { %v1923_v41 = vpop.f32.mrf.mxu0  ;;  %v1938_v42 = vpop.f32.mrf.mxu1 }
 0x611   :  { %v1779_v41 = vld [vmem:[%s2260_s1 + $0xb2] ss:$0 sm:$0xff] }
 0x612   :  { %v1404_v43 = vpop.f32.mrf.mxu0 }
 0x613   :  { %1507 = vrot.lane.b32.xlu0 %v1404_v43, %s2024_s12  ;;  %s2029_s12 = smov [#allocation2]  }
 0x614   :  { %v1933_v44 = vpop.f32.mrf.mxu0  ;;  %s1737_s13 = sshll.u32 %s2029_s12, 4  ;;  %s1738_s13 = int_to_ptr.vmem [resolvable:$true] %s1737_s13 }
 0x615   :  { %s1998_s14 = scalar_lea.vmem %s1738_s13, 256  ;;  %p2003_p1 = scmp.lt.s32.totalorder %s1738_s13, %s1738_s13 }
 0x616   :  { %p1999_p0 = scmp.ne.s32.totalorder %s1738_s13, %s1998_s14  ;;  %p2004_p2 = scmp.lt.s32.totalorder %s1998_s14, %s1998_s14 }
 0x618   :  { %p2005_p3 = por %p2004_p2, %p2003_p1 }
 0x61a   :  { %p2006_p4 = pnand %p2005_p3, %p1999_p0 }
 0x675   :  { %v1486_v50 = vpop.permute.xlu1 %1485 }
 0x676   :  { %v1514_v55 = vsel %vm383_vm5, %v878_v26, %v1486_v50 }
 0x679   :  { %v1494_v51 = vpop.permute.xlu1 %1493  ;;  %v1484_v52 = vpop.permute.xlu0 %1483 }
 0x67a   :  { %v1517_v56 = vsel %vm1515_vm6, %v1514_v55, %v1494_v51  ;;  %v1513_v61 = vsel %vm383_vm5, %v802_v28, %v1484_v52 }
 0x67d   :  { %v1502_v53 = vpop.permute.xlu1 %1501  ;;  %v1492_v54 = vpop.permute.xlu0 %1491 }
 0x67e   :  { %v1520_v57 = vsel %vm1518_vm7, %v1517_v56, %v1502_v53  ;;  %v1516_v62 = vsel %vm1515_vm6, %v1513_v61, %v1492_v54 }
 0x681   :  { %v1510_v58 = vpop.permute.xlu1 %1509  ;;  %v1500_v59 = vpop.permute.xlu0 %1499 }
 0x682   :  { %v1523_v60 = vsel %vm1521_vm8, %v1520_v57, %v1510_v58  ;;  %v1519_v0 = vsel %vm1518_vm7, %v1516_v62, %v1500_v59 }
 0x683   :  { %v1536_v63 = vmul.f32 %v1523_v60, %v1523_v60  ;;  %v1526_v3 = vsel %vm1524_vm9, %v1523_v60, 0.0 }
 0x685   :  { %v1508_v1 = vpop.permute.xlu0 %1507  ;;  %v1538_v7 = vsel %vm1524_vm9, %v1536_v63, 0.0 }
 0x686   :  { %v1522_v2 = vsel %vm1521_vm8, %v1519_v0, %v1508_v1 }
 0x687   :  { %v1525_v4 = vsel %vm1524_vm9, %v1522_v2, 0.0  ;;  %v1535_v5 = vmul.f32 %v1522_v2, %v1522_v2 }
 0x688   :  { %v1527_v6 = vadd.f32 %v1526_v3, %v1525_v4 }
 0x689   :  { %v1537_v8 = vsel %vm1524_vm9, %v1535_v5, 0.0 }
 0x68a   :  { %v1528_v9 = vrot.slane %v1527_v6, 4  ;;  %v1539_v11 = vadd.f32 %v1538_v7, %v1537_v8 }
 0x68c   :  { %v1529_v12 = vadd.f32 %v1528_v9, %v1527_v6  ;;  %v1540_v13 = vrot.slane %v1539_v11, 4 }
 0x68e   :  { %v1530_v14 = vrot.slane %v1529_v12, 2  ;;  %v1541_v15 = vadd.f32 %v1540_v13, %v1539_v11 }
 0x690   :  { %v1531_v16 = vadd.f32 %v1530_v14, %v1529_v12  ;;  %v1542_v17 = vrot.slane %v1541_v15, 2 }
 0x692   :  { %v1532_v18 = vrot.slane %v1531_v16, 1  ;;  %v1543_v19 = vadd.f32 %v1542_v17, %v1541_v15 }
 0x694   :  { %v1533_v20 = vadd.f32 %v1532_v18, %v1531_v16  ;;  %v1544_v21 = vrot.slane %v1543_v19, 1 }
 0x696   :  { %v1534_v22 = vmul.f32 0.0625, %v1533_v20  ;;  %v1545_v23 = vadd.f32 %v1544_v21, %v1543_v19 }
 0x698   :  { %v1546_v24 = vmul.f32 0.0625, %v1545_v23  ;;  %v1547_v25 = vmul.f32 %v1534_v22, %v1534_v22  ;;  %v1549_v28 = vsub.f32 %v1522_v2, %v1534_v22  ;;  %v1550_v29 = vsub.f32 %v1523_v60, %v1534_v22 }
 0x69a   :  { %v1548_v26 = vsub.f32 %v1546_v24, %v1547_v25 }
 0x69c   :  { %v1551_v27 = vadd.f32 1e-05, %v1548_v26 }
 0x69e   :  { %1992 = vrsqrt.f32 %v1551_v27 }
 0x6ab   :  { %v1993_v30 = vpop.eup %1992 }
 0x6ac   :  { %v1553_v31 = vmul.f32 %v1993_v30, %v1549_v28  ;;  %v1554_v32 = vmul.f32 %v1993_v30, %v1550_v29 }
 0x6ae   :  { %1949 = vmatprep.mubr.msk.f32.mxu0 %vm1524_vm9, %v1553_v31 }
 0x6af   :  { %1950 = vmatmul.mubr.msk.f32.vlgmr.msra.gmra.mxu0 %vm1524_vm9, %v1554_v32 }
 0x76f   :  { %v1951_v10 = vpop.f32.mrf.mxu0 }
 0x770   :  { %v1637_v36 = vadd.f32 %v1951_v10, %v1776_v35 }
 0x771   :  { %v1631_v37 = vpop.f32.mrf.mxu0 }
 0x772   :  { %v1632_v38 = vadd.f32 %v1776_v35, %v1631_v37  ;;  %v1641_v40 = vmax.f32 %v1637_v36, 0.0 }
 0x774   :  { %v1640_v39 = vmax.f32 %v1632_v38, 0.0 }
 0x776   :  { %1956 = vmatprep.mubr.msk.f32.mxu1 %vm1515_vm6, %v1640_v39 }
 0x777   :  { %1957 = vmatmul.mubr.msk.f32.vlgmr.msra.gmra.mxu1 %vm1515_vm6, %v1641_v40 }
 0x837   :  { %v1958_v42 = vpop.f32.mrf.mxu1 }
 0x838   :  { %v1724_v43 = vadd.f32 %v1958_v42, %v1779_v41 }
 0x839   :  { %v1718_v44 = vpop.f32.mrf.mxu1 }
 0x83a   :  { %1994 = vtanh.f32 %v1724_v43  ;;  %v1719_v45 = vadd.f32 %v1779_v41, %v1718_v44 }
 0x83c   :  { %1996 = vtanh.f32 %v1719_v45 }
 0x847   :  { %v1995_v46 = vpop.eup %1994 }
 0x848   :  { %1731 = vst.msk [vmem:[#allocation2 + $0x8] sm:$0xff] %vm1729_vm10, %v1995_v46 }
 0x849   :  { %v1997_v47 = vpop.eup %1996 }
 0x84a   :  { %1730 = vst.msk [vmem:[#allocation2] sm:$0xff] %vm1729_vm10, %v1997_v47 }
 0x84b   :  { %2009 = shalt.err (!%p2006_p4)
}
 0x84c   :  { %s2030_s1 = smov 128  }
 0x84d   :  { %1743 = dma.vmem_to_hbm [thread:$0]  %s1738_s13, 256, %s2261_s2, [#allocation3], %s2030_s1, %s2030_s1, %s2028_s21  }
 0x84e   :  { %2018 = dma.done.wait [#allocation3], 256  }
 0x84f   :  { %2019 = vsyncadd [#allocation3], 4294967040 }
 0x850   :  { %1747 = vsyncpa [#allocation3], 1 }

</bundles_post_ra>
